<compile_context>
chip_gen: v5e
topology: v5e:2x2
jax: 0.10.0
libtpu: 0.0.40
codegen_flags: <defaults>
</compile_context>

<pallas_src>
import math

import jax
import jax.numpy as jnp
from jax.experimental import pallas as pl
from jax.experimental.pallas import tpu as pltpu

LN_EPS = 1e-5


def _round_up(x, m):
    return (x + m - 1) // m * m


def _make_lm_head_kernel(eps):
    inv_sqrt2 = 1.0 / math.sqrt(2.0)

    def kernel(x_ref, w1_ref, b1_ref, g_ref, be_ref, w2_ref, b2_ref, o_ref, h_scr):
        # dense + gelu + layernorm computed once per row tile (first vocab step);
        # the result stays resident in VMEM scratch (bf16) across the vocab axis.
        # NOTE: correctness relies on the vocab axis being the LAST grid axis and
        # marked "arbitrary" (h_scr is carried across it).
        @pl.when(pl.program_id(1) == 0)
        def _():
            # bf16 operands on the MXU, fp32 accumulation.
            h = jnp.dot(x_ref[...].astype(jnp.bfloat16), w1_ref[...],
                        preferred_element_type=jnp.float32) + b1_ref[...]
            # exact (erf-based) gelu, matching transformers' `gelu`
            h = 0.5 * h * (1.0 + jax.lax.erf(h * inv_sqrt2))
            mean = jnp.mean(h, axis=-1, keepdims=True)
            var = jnp.mean((h - mean) * (h - mean), axis=-1, keepdims=True)
            h = (h - mean) * jax.lax.rsqrt(var + eps)
            h = h * g_ref[...] + be_ref[...]
            h_scr[...] = h.astype(h_scr.dtype)   # bf16 for the decoder matmul

        out = jnp.dot(h_scr[...], w2_ref[...],
                      preferred_element_type=jnp.float32) + b2_ref[...]
        o_ref[...] = out.astype(o_ref.dtype)

    return kernel


def prepare_params(raw, *, tv=1024):
    """One-time parameter prep (keep OUT of the per-call path).

    Pads the decoder weight/bias along the vocab axis to a multiple of `tv` and
    casts the matmul weights to bf16, so the hot path never re-pads / re-casts
    ~100-200 MB of weights on every invocation.
    """
    tv = _round_up(max(tv, 128), 128)
    H, V = raw["dec_w"].shape
    Vp = _round_up(max(V, 128), tv)
    dec_w, dec_b = raw["dec_w"], raw["dec_b"]
    if Vp != V:
        dec_w = jnp.pad(dec_w, ((0, 0), (0, Vp - V)))
        dec_b = jnp.pad(dec_b, ((0, Vp - V),))
    return {
        "dense_w_bf16": raw["dense_w"].astype(jnp.bfloat16),     # [H, H]
        "dense_b": raw["dense_b"].reshape(1, H).astype(jnp.float32),
        "ln_g": raw["ln_g"].reshape(1, H).astype(jnp.float32),
        "ln_b": raw["ln_b"].reshape(1, H).astype(jnp.float32),
        "dec_w_bf16": dec_w.astype(jnp.bfloat16),                # [H, Vp]
        "dec_b": dec_b.reshape(1, Vp).astype(jnp.float32),       # [1, Vp]
        "hidden_size": H,
        "vocab_size": V,
        "vocab_padded": Vp,
        "tv": tv,
    }


def roberta_lm_head(features, prep, *, tm=1024, eps=LN_EPS,
                    out_dtype=jnp.float32,
                    vmem_limit_bytes=48 * 1024 * 1024):
    """features: [B, S, H] float32 -> logits [B, S, V] (out_dtype, default fp32)."""
    B, S, H = features.shape
    assert H == prep["hidden_size"]
    V, Vp, tv = prep["vocab_size"], prep["vocab_padded"], prep["tv"]

    M = B * S
    # Row tile: as large as possible (decoder-weight HBM restreaming scales as
    # 1/tm), 16-row aligned (bf16 sublane tile for h_scr), but keep at least two
    # row tiles for large M so the "parallel" axis shards across v7x's 2 TCs.
    tm = max(16, _round_up(tm, 16))
    tm_eff = min(tm, _round_up(M, 16))
    if M >= 2048:
        tm_eff = min(tm_eff, _round_up(M // 2, 256))
    Mp = _round_up(M, tm_eff)
    tv_eff = min(tv, Vp)             # Vp is a multiple of tv, so tv_eff | Vp

    x2d = features.reshape(M, H).astype(jnp.float32)
    if Mp != M:
        x2d = jnp.pad(x2d, ((0, Mp - M), (0, 0)))

    grid = (Mp // tm_eff, Vp // tv_eff)
    kernel = _make_lm_head_kernel(eps)

    out_bytes = jnp.dtype(out_dtype).itemsize
    cost = pl.CostEstimate(
        flops=2 * Mp * H * (H + Vp),
        transcendentals=Mp * H,
        bytes_accessed=(Mp * H * 4                # x read
                        + H * H * 2               # dense weight (bf16, read once)
                        + grid[0] * H * Vp * 2    # decoder weight stream per row tile
                        + Mp * Vp * out_bytes),   # logits write
    )

    # TODO(synk): constant-block-index operands (w1/b1/ln) could be single-buffered
    # via pipeline_mode=pl.Buffered(1), and the decoder-weight slice triple-buffered
    # on v5e/v6e; at tm=1024/tv=1024/H=1024 the double-buffered budget is ~26 MiB,
    # already inside v7x's 64 MiB VMEM, so default buffering is kept for robustness.
    out2d = pl.pallas_call(
        kernel,
        out_shape=jax.ShapeDtypeStruct((Mp, Vp), out_dtype),
        grid_spec=pltpu.PrefetchScalarGridSpec(
            num_scalar_prefetch=0,
            grid=grid,
            in_specs=[
                pl.BlockSpec((tm_eff, H), lambda i, j: (i, 0)),   # x rows
                pl.BlockSpec((H, H), lambda i, j: (0, 0)),        # dense weight (bf16)
                pl.BlockSpec((1, H), lambda i, j: (0, 0)),        # dense bias
                pl.BlockSpec((1, H), lambda i, j: (0, 0)),        # ln gamma
                pl.BlockSpec((1, H), lambda i, j: (0, 0)),        # ln beta
                pl.BlockSpec((H, tv_eff), lambda i, j: (0, j)),   # decoder weight slice (bf16)
                pl.BlockSpec((1, tv_eff), lambda i, j: (0, j)),   # decoder bias slice
            ],
            out_specs=pl.BlockSpec((tm_eff, tv_eff), lambda i, j: (i, j)),
            scratch_shapes=[pltpu.VMEM((tm_eff, H), jnp.bfloat16)],
        ),
        compiler_params=pltpu.CompilerParams(
            dimension_semantics=("parallel", "arbitrary"),
            vmem_limit_bytes=vmem_limit_bytes),
        cost_estimate=cost,
    )(x2d, prep["dense_w_bf16"], prep["dense_b"], prep["ln_g"], prep["ln_b"],
      prep["dec_w_bf16"], prep["dec_b"])

    return out2d[:M, :V].reshape(B, S, V)


def init_params(key, hidden_size, vocab_size):
    k1, k2, k3 = jax.random.split(key, 3)
    scale = 0.02
    return {
        # stored pre-transposed for x @ W layout
        "dense_w": scale * jax.random.normal(k1, (hidden_size, hidden_size), jnp.float32),
        "dense_b": scale * jax.random.normal(k2, (hidden_size,), jnp.float32),
        "ln_g": jnp.ones((hidden_size,), jnp.float32),   # LayerNorm init
        "ln_b": jnp.zeros((hidden_size,), jnp.float32),
        "dec_w": scale * jax.random.normal(k3, (hidden_size, vocab_size), jnp.float32),
        "dec_b": jnp.zeros((vocab_size,), jnp.float32),  # module inits bias to zeros
    }


def reference(features, params, eps=LN_EPS):
    x = features @ params["dense_w"] + params["dense_b"]
    x = 0.5 * x * (1.0 + jax.lax.erf(x / jnp.sqrt(2.0)))
    mean = jnp.mean(x, axis=-1, keepdims=True)
    var = jnp.mean((x - mean) ** 2, axis=-1, keepdims=True)
    x = (x - mean) * jax.lax.rsqrt(var + eps)
    x = x * params["ln_g"] + params["ln_b"]
    return x @ params["dec_w"] + params["dec_b"]


if __name__ == "__main__":
    # Small demo shapes; V deliberately NOT a multiple of 128 to exercise padding.
    B, S, H, V = 2, 8, 128, 1000
    key = jax.random.PRNGKey(0)
    kp, kx = jax.random.split(key)
    raw_params = init_params(kp, H, V)
    prep = prepare_params(raw_params, tv=1024)   # one-time pad + bf16 cast (off hot path)
    features = jax.random.normal(kx, (B, S, H), jnp.float32)

    out = roberta_lm_head(features, prep)
    out = jax.block_until_ready(out)

    ref = reference(features, raw_params)
    assert out.shape == (B, S, V)
    # bf16 dense + bf16 decoder matmuls -> looser tolerance than pure fp32.
    assert jnp.allclose(out, ref, atol=3e-2, rtol=3e-2), "mismatch vs reference"
    print("KERNEL_OK")
</pallas_src>

<mosaic_0001>
module attributes {stable_mosaic.version = 11 : i64} {
  func.func @kernel(%arg0: i32, %arg1: i32, %arg2: memref<16x128xf32, #tpu.memory_space<vmem>>, %arg3: memref<128x128xbf16, #tpu.memory_space<vmem>>, %arg4: memref<1x128xf32, #tpu.memory_space<vmem>>, %arg5: memref<1x128xf32, #tpu.memory_space<vmem>>, %arg6: memref<1x128xf32, #tpu.memory_space<vmem>>, %arg7: memref<128x1024xbf16, #tpu.memory_space<vmem>>, %arg8: memref<1x1024xf32, #tpu.memory_space<vmem>>, %arg9: memref<16x1024xf32, #tpu.memory_space<vmem>>, %arg10: memref<16x128xbf16, #tpu.memory_space<vmem>>) attributes {dimension_semantics = [#tpu.dimension_semantics<parallel>, #tpu.dimension_semantics<arbitrary>], iteration_bounds = array<i64: 1, 1>, scalar_prefetch = 0 : i64, scratch_operands = 1 : i64, tpu.core_type = #tpu.core_type<tc>, window_params = [{transform_indices = @transform_0, window_bounds = array<i64: 16, 128>}, {pipeline_mode = #tpu.pipeline_mode<synchronous>, transform_indices = @transform_1, window_bounds = array<i64: 128, 128>}, {pipeline_mode = #tpu.pipeline_mode<synchronous>, transform_indices = @transform_2, window_bounds = array<i64: 1, 128>}, {pipeline_mode = #tpu.pipeline_mode<synchronous>, transform_indices = @transform_3, window_bounds = array<i64: 1, 128>}, {pipeline_mode = #tpu.pipeline_mode<synchronous>, transform_indices = @transform_4, window_bounds = array<i64: 1, 128>}, {transform_indices = @transform_5, window_bounds = array<i64: 128, 1024>}, {transform_indices = @transform_6, window_bounds = array<i64: 1, 1024>}, {transform_indices = @transform_7, window_bounds = array<i64: 16, 1024>}]} {
    %c0_i32 = arith.constant 0 : i32
    %0 = arith.cmpi eq, %arg1, %c0_i32 : i32
    %1 = arith.extui %0 : i1 to i32
    %c0_i32_0 = arith.constant 0 : i32
    %2 = arith.cmpi ne, %1, %c0_i32_0 : i32
    scf.if %2 {
      %c0_8 = arith.constant 0 : index
      %c0_9 = arith.constant 0 : index
      %10 = vector.load %arg2[%c0_8, %c0_9] : memref<16x128xf32, #tpu.memory_space<vmem>>, vector<16x128xf32>
      %11 = arith.truncf %10 : vector<16x128xf32> to vector<16x128xbf16>
      %c0_10 = arith.constant 0 : index
      %c0_11 = arith.constant 0 : index
      %12 = vector.load %arg3[%c0_10, %c0_11] : memref<128x128xbf16, #tpu.memory_space<vmem>>, vector<128x128xbf16>
      %cst_12 = arith.constant dense<0.000000e+00> : vector<16x128xf32>
      %13 = tpu.matmul %11, %12, %cst_12 {dimension_numbers = #tpu.dot_dimension_numbers<[1], [0], [0], [1], [0, 0, 1, 1], [], []>} : vector<16x128xbf16>, vector<128x128xbf16>, vector<16x128xf32> -> vector<16x128xf32>
      %c0_13 = arith.constant 0 : index
      %c0_14 = arith.constant 0 : index
      %14 = vector.load %arg4[%c0_13, %c0_14] : memref<1x128xf32, #tpu.memory_space<vmem>>, vector<1x128xf32>
      %15 = vector.broadcast %14 : vector<1x128xf32> to vector<16x128xf32>
      %16 = arith.addf %13, %15 : vector<16x128xf32>
      %cst_15 = arith.constant 5.000000e-01 : f32
      %17 = vector.broadcast %cst_15 : f32 to vector<16x128xf32>
      %18 = arith.mulf %17, %16 : vector<16x128xf32>
      %cst_16 = arith.constant 0.707106769 : f32
      %19 = vector.broadcast %cst_16 : f32 to vector<16x128xf32>
      %20 = arith.mulf %16, %19 : vector<16x128xf32>
      %21 = math.erf %20 : vector<16x128xf32>
      %cst_17 = arith.constant 1.000000e+00 : f32
      %22 = vector.broadcast %cst_17 : f32 to vector<16x128xf32>
      %23 = arith.addf %22, %21 : vector<16x128xf32>
      %24 = arith.mulf %18, %23 : vector<16x128xf32>
      %cst_18 = arith.constant dense<0.000000e+00> : vector<16xf32>
      %25 = vector.multi_reduction <add>, %24, %cst_18 [1] : vector<16x128xf32> to vector<16xf32>
      %26 = vector.shape_cast %25 : vector<16xf32> to vector<16x1xf32>
      %cst_19 = arith.constant 1.280000e+02 : f32
      %27 = vector.broadcast %cst_19 : f32 to vector<16x1xf32>
      %28 = arith.divf %26, %27 : vector<16x1xf32>
      %29 = vector.broadcast %28 : vector<16x1xf32> to vector<16x128xf32>
      %30 = arith.subf %24, %29 : vector<16x128xf32>
      %31 = vector.broadcast %28 : vector<16x1xf32> to vector<16x128xf32>
      %32 = arith.subf %24, %31 : vector<16x128xf32>
      %33 = arith.mulf %30, %32 : vector<16x128xf32>
      %cst_20 = arith.constant dense<0.000000e+00> : vector<16xf32>
      %34 = vector.multi_reduction <add>, %33, %cst_20 [1] : vector<16x128xf32> to vector<16xf32>
      %35 = vector.shape_cast %34 : vector<16xf32> to vector<16x1xf32>
      %cst_21 = arith.constant 1.280000e+02 : f32
      %36 = vector.broadcast %cst_21 : f32 to vector<16x1xf32>
      %37 = arith.divf %35, %36 : vector<16x1xf32>
      %38 = vector.broadcast %28 : vector<16x1xf32> to vector<16x128xf32>
      %39 = arith.subf %24, %38 : vector<16x128xf32>
      %cst_22 = arith.constant 9.99999974E-6 : f32
      %40 = vector.broadcast %cst_22 : f32 to vector<16x1xf32>
      %41 = arith.addf %37, %40 : vector<16x1xf32>
      %42 = math.rsqrt %41 : vector<16x1xf32>
      %43 = vector.broadcast %42 : vector<16x1xf32> to vector<16x128xf32>
      %44 = arith.mulf %39, %43 : vector<16x128xf32>
      %c0_23 = arith.constant 0 : index
      %c0_24 = arith.constant 0 : index
      %45 = vector.load %arg5[%c0_23, %c0_24] : memref<1x128xf32, #tpu.memory_space<vmem>>, vector<1x128xf32>
      %46 = vector.broadcast %45 : vector<1x128xf32> to vector<16x128xf32>
      %47 = arith.mulf %44, %46 : vector<16x128xf32>
      %c0_25 = arith.constant 0 : index
      %c0_26 = arith.constant 0 : index
      %48 = vector.load %arg6[%c0_25, %c0_26] : memref<1x128xf32, #tpu.memory_space<vmem>>, vector<1x128xf32>
      %49 = vector.broadcast %48 : vector<1x128xf32> to vector<16x128xf32>
      %50 = arith.addf %47, %49 : vector<16x128xf32>
      %51 = arith.truncf %50 : vector<16x128xf32> to vector<16x128xbf16>
      %c0_27 = arith.constant 0 : index
      %c0_28 = arith.constant 0 : index
      %52 = vector.load %arg10[%c0_27, %c0_28] : memref<16x128xbf16, #tpu.memory_space<vmem>>, vector<16x128xbf16>
      tpu.vector_store %arg10[%c0_27, %c0_28], %51 {strides = array<i32>} : memref<16x128xbf16, #tpu.memory_space<vmem>>, vector<16x128xbf16>,
    } else {
    }
    %c0 = arith.constant 0 : index
    %c0_1 = arith.constant 0 : index
    %3 = vector.load %arg10[%c0, %c0_1] : memref<16x128xbf16, #tpu.memory_space<vmem>>, vector<16x128xbf16>
    %c0_2 = arith.constant 0 : index
    %c0_3 = arith.constant 0 : index
    %4 = vector.load %arg7[%c0_2, %c0_3] : memref<128x1024xbf16, #tpu.memory_space<vmem>>, vector<128x1024xbf16>
    %cst = arith.constant dense<0.000000e+00> : vector<16x1024xf32>
    %5 = tpu.matmul %3, %4, %cst {dimension_numbers = #tpu.dot_dimension_numbers<[1], [0], [0], [1], [0, 0, 1, 1], [], []>} : vector<16x128xbf16>, vector<128x1024xbf16>, vector<16x1024xf32> -> vector<16x1024xf32>
    %c0_4 = arith.constant 0 : index
    %c0_5 = arith.constant 0 : index
    %6 = vector.load %arg8[%c0_4, %c0_5] : memref<1x1024xf32, #tpu.memory_space<vmem>>, vector<1x1024xf32>
    %7 = vector.broadcast %6 : vector<1x1024xf32> to vector<16x1024xf32>
    %8 = arith.addf %5, %7 : vector<16x1024xf32>
    %c0_6 = arith.constant 0 : index
    %c0_7 = arith.constant 0 : index
    %9 = vector.load %arg9[%c0_6, %c0_7] : memref<16x1024xf32, #tpu.memory_space<vmem>>, vector<16x1024xf32>
    tpu.vector_store %arg9[%c0_6, %c0_7], %8 {strides = array<i32>} : memref<16x1024xf32, #tpu.memory_space<vmem>>, vector<16x1024xf32>,
    return
  }
  func.func @transform_0(%arg0: i32, %arg1: i32) -> (i32, i32) {
    %c0_i32 = arith.constant 0 : i32
    %c0_i32_0 = arith.constant 0 : i32
    return %arg0, %c0_i32 : i32, i32
  }
  func.func @transform_1(%arg0: i32, %arg1: i32) -> (i32, i32) {
    %c0_i32 = arith.constant 0 : i32
    %c0_i32_0 = arith.constant 0 : i32
    %c0_i32_1 = arith.constant 0 : i32
    return %c0_i32, %c0_i32_0 : i32, i32
  }
  func.func @transform_2(%arg0: i32, %arg1: i32) -> (i32, i32) {
    %c0_i32 = arith.constant 0 : i32
    %c0_i32_0 = arith.constant 0 : i32
    %c0_i32_1 = arith.constant 0 : i32
    return %c0_i32, %c0_i32_0 : i32, i32
  }
  func.func @transform_3(%arg0: i32, %arg1: i32) -> (i32, i32) {
    %c0_i32 = arith.constant 0 : i32
    %c0_i32_0 = arith.constant 0 : i32
    %c0_i32_1 = arith.constant 0 : i32
    return %c0_i32, %c0_i32_0 : i32, i32
  }
  func.func @transform_4(%arg0: i32, %arg1: i32) -> (i32, i32) {
    %c0_i32 = arith.constant 0 : i32
    %c0_i32_0 = arith.constant 0 : i32
    %c0_i32_1 = arith.constant 0 : i32
    return %c0_i32, %c0_i32_0 : i32, i32
  }
  func.func @transform_5(%arg0: i32, %arg1: i32) -> (i32, i32) {
    %c0_i32 = arith.constant 0 : i32
    %c0_i32_0 = arith.constant 0 : i32
    return %c0_i32, %arg1 : i32, i32
  }
  func.func @transform_6(%arg0: i32, %arg1: i32) -> (i32, i32) {
    %c0_i32 = arith.constant 0 : i32
    %c0_i32_0 = arith.constant 0 : i32
    return %c0_i32, %arg1 : i32, i32
  }
  func.func @transform_7(%arg0: i32, %arg1: i32) -> (i32, i32) {
    %c0_i32 = arith.constant 0 : i32
    return %arg0, %arg1 : i32, i32
  }
}

</mosaic_0001>

<bundles_post_ra>
// kernel: tpu_custom_call.1
= control target key start
LH: loop header
LB: loop body
LE: loop exit
PB: predicated region body
PF: predicated region fallthrough
CT: control target
= control target key end

     0   :  { %12 = vsyncpa [#allocation4], 0  ;;  %s1554_s0 = inlined_call_operand.hbm [shape: f32[16,128], index: 0, kind: input, shape index: {}]   ;;  %s1555_s1 = inlined_call_operand.hbm [shape: bf16[128,128], index: 1, kind: input, shape index: {}]   ;;  %s1556_s2 = inlined_call_operand.vmem [shape: f32[1,128], index: 2, kind: input, shape index: {}]   ;;  %s1557_s3 = inlined_call_operand.vmem [shape: f32[1,128], index: 3, kind: input, shape index: {}]   ;;  %s1558_s4 = inlined_call_operand.vmem [shape: f32[1,128], index: 4, kind: input, shape index: {}]   ;;  %s1559_s5 = inlined_call_operand.hbm [shape: bf16[128,1024], index: 5, kind: input, shape index: {}]   ;;  %s1560_s6 = inlined_call_operand.hbm [shape: f32[1,1024], index: 6, kind: input, shape index: {}]   ;;  %s1561_s7 = inlined_call_operand.hbm [shape: f32[16,1024], index: 7, kind: output, shape index: {}]  }
   0x1   :  { %13 = vsyncpa [#allocation7], 0 }
   0x2   :  { %14 = vsyncpa [#allocation10], 0  ;;  %s33_s26 = sshll.u32 %s1555_s1, 4  ;;  %s34_s26 = int_to_ptr.hbm [resolvable:$true] %s33_s26 }
   0x3   :  { %15 = vsyncpa [#allocation5], 0  ;;  %s1413_s27 = smov [#allocation6]   ;;  %s20_s8 = sshll.u32 %s1554_s0, 4  ;;  %s21_s8 = int_to_ptr.hbm [resolvable:$true] %s20_s8 }
   0x4   :  { %s35_s28 = sshll.u32 %s1413_s27, 4  ;;  %s1414_s9 = smov 64   ;;  %s36_s28 = int_to_ptr.vmem [resolvable:$true] %s35_s28 }
   0x5   :  { %s1415_s10 = smov 4   ;;  %s1416_s11 = smov [#allocation3]  }
   0x6   :  { %41 = dma.hbm_to_vmem [thread:$0]  %s34_s26, 1024, %s36_s28, [#allocation7], %s1414_s9, %s1414_s9, %s1415_s10  }
   0x7   :  { %s22_s12 = sshll.u32 %s1416_s11, 4  ;;  %s1417_s13 = smov 128   ;;  %s23_s12 = int_to_ptr.vmem [resolvable:$true] %s22_s12 }
   0x8   :  { %s1418_s1 = smov 8   ;;  %s52_s16 = sshll.u32 %s1559_s5, 4  ;;  %s53_s16 = int_to_ptr.hbm [resolvable:$true] %s52_s16 }
   0x9   :  { %28 = dma.hbm_to_vmem [thread:$0]  %s21_s8, 256, %s23_s12, [#allocation4], %s1417_s13, %s1417_s13, %s1418_s1  }
   0xa   :  { %s1419_s17 = smov [#allocation8]   ;;  %s66_s20 = sshll.u32 %s1560_s6, 4  ;;  %s67_s20 = int_to_ptr.hbm [resolvable:$true] %s66_s20 }
   0xb   :  { %s54_s18 = sshll.u32 %s1419_s17, 4  ;;  %s1420_s21 = smov 512   ;;  %s55_s18 = int_to_ptr.vmem [resolvable:$true] %s54_s18 }
   0xc   :  { %s1421_s22 = smov 32   ;;  %s1422_s23 = smov [#allocation9]  }
   0xd   :  { %60 = dma.hbm_to_vmem [thread:$0]  %s53_s16, 8192, %s55_s18, [#allocation7], %s1420_s21, %s1420_s21, %s1421_s22  }
   0xe   :  { %s68_s24 = sshll.u32 %s1422_s23, 4  ;;  %s69_s24 = int_to_ptr.vmem [resolvable:$true] %s68_s24 }
   0xf   :  { %71 = dma.hbm_to_vmem [thread:$0]  %s67_s20, 128, %s69_s24, [#allocation10]  }
  0x10   :  { %1405 = dma.done.wait [#allocation4], 256  }
  0x11   :  { %1406 = vsyncadd [#allocation4], 4294967040 }
  0x12   :  { %1407 = dma.done.wait [#allocation7], 9216  }
  0x13   :  { %1408 = vsyncadd [#allocation7], 4294958080 }
  0x14   :  { %1409 = dma.done.wait [#allocation10], 128  }
  0x15   :  { %1410 = vsyncadd [#allocation10], 4294967168  ;;  %v1188_v0 = vld [vmem:[#allocation6 + $0x38] sm:$0xff]  ;;  %v1187_v1 = vld [vmem:[#allocation6 + $0x30] sm:$0xff]  ;;  %s872_s30 = sshll.u32 %s1561_s7, 4  ;;  %s1425_s8 = smov 1024   ;;  %s873_s30 = int_to_ptr.hbm [resolvable:$true] %s872_s30 }
  0x16   :  { %163 = vmatpush.bf16.msra.mxu0 %v1188_v0  ;;  %v1186_v2 = vld [vmem:[#allocation6 + $0x28] sm:$0xff]  ;;  %v1185_v3 = vld [vmem:[#allocation6 + $0x20] sm:$0xff]  ;;  %v1184_v4 = vld [vmem:[#allocation6 + $0x18] sm:$0xff] }
  0x17   :  { %v1183_v5 = vld [vmem:[#allocation6 + $0x10] sm:$0xff]  ;;  %v1182_v6 = vld [vmem:[#allocation6 + $0x8] sm:$0xff]  ;;  %v1181_v7 = vld [vmem:[#allocation6] sm:$0xff] }
  0x18   :  { %v92_v8 = vld [vmem:[#allocation3] sm:$0xff]  ;;  %v93_v9 = vld [vmem:[#allocation3 + $0x8] sm:$0xff]  ;;  %v1272_v11 = vld [vmem:[%s1556_s2] ss:$0 sm:$0xff] }
  0x19   :  { %v94_v10 = vpack.c.bf16 %v93_v9, %v92_v8 }
  0x1a   :  { %164 = vmatpush.bf16.msra.mxu0 %v1187_v1 }
  0x1e   :  { %165 = vmatpush.bf16.msra.mxu0 %v1186_v2 }
  0x22   :  { %166 = vmatpush.bf16.msra.mxu0 %v1185_v3 }
  0x26   :  { %167 = vmatpush.bf16.msra.mxu0 %v1184_v4 }
  0x2a   :  { %168 = vmatpush.bf16.msra.mxu0 %v1183_v5 }
  0x2e   :  { %169 = vmatpush.bf16.msra.mxu0 %v1182_v6 }
  0x32   :  { %170 = vmatpush.bf16.msra.mxu0 %v1181_v7 }
  0x35   :  { %171 = vmatmul.bf16.vlgmr.msra.gmra.mxu0 %v94_v10 }
  0xb2   :  { %v172_v12 = vpop.f32.mrf.mxu0 }
  0xb3   :  { %v1483_v13 = vadd.f32 %v1272_v11, %v172_v12 }
  0xb5   :  { %v179_v14 = vmul.f32 0.70710677, %v1483_v13 }
  0xb7   :  { %v181_v15 = vmul.f32 %v179_v14, %v179_v14 }
  0xb9   :  { %v182_v16 = vmin.f32 %v181_v15, 16.0 }
  0xba   :  { %v174_v17 = vpop.f32.mrf.mxu0 }
  0xbb   :  { %v183_v18 = vmul.f32 2.1237322e-06, %v182_v16  ;;  %v1486_v19 = vadd.f32 %v1272_v11, %v174_v17  ;;  %v194_v20 = vmul.f32 3.8918573e-05, %v182_v16 }
  0xbd   :  { %v184_v21 = vadd.f32 0.00028619796, %v183_v18  ;;  %v1489_v22 = vmul.f32 0.70710677, %v1486_v19  ;;  %v195_v23 = vadd.f32 0.001143296, %v194_v20 }
  0xbf   :  { %v185_v24 = vmul.f32 %v184_v21, %v182_v16  ;;  %v221_v25 = vmul.f32 %v1489_v22, %v1489_v22  ;;  %v196_v26 = vmul.f32 %v195_v23, %v182_v16  ;;  %v177_v21 = vmul.f32 0.5, %v1483_v13 }
  0xc1   :  { %v222_v27 = vmin.f32 %v221_v25, 16.0  ;;  %v197_v28 = vadd.f32 0.014752088, %v196_v26  ;;  %v186_v29 = vadd.f32 0.0036580483, %v185_v24 }
  0xc3   :  { %v223_v30 = vmul.f32 2.1237322e-06, %v222_v27  ;;  %v234_v31 = vmul.f32 3.8918573e-05, %v222_v27  ;;  %v198_v32 = vmul.f32 %v197_v28, %v182_v16  ;;  %v187_v36 = vmul.f32 %v186_v29, %v182_v16 }
  0xc5   :  { %v224_v33 = vadd.f32 0.00028619796, %v223_v30  ;;  %v235_v34 = vadd.f32 0.001143296, %v234_v31  ;;  %v199_v35 = vadd.f32 0.112945676, %v198_v32 }
  0xc6   :  { %v188_v43 = vadd.f32 0.05243302, %v187_v36  ;;  %v178_v30 = vmul.f32 0.5, %v1486_v19 }
  0xc7   :  { %v225_v37 = vmul.f32 %v224_v33, %v222_v27  ;;  %v236_v38 = vmul.f32 %v235_v34, %v222_v27  ;;  %v200_v39 = vmul.f32 %v199_v35, %v182_v16  ;;  %v1423_v33 = vmov 128.0  }
  0xc8   :  { %v189_v49 = vmul.f32 %v188_v43, %v182_v16 }
  0xc9   :  { %v237_v40 = vadd.f32 0.014752088, %v236_v38  ;;  %v226_v41 = vadd.f32 0.0036580483, %v225_v37  ;;  %v201_v42 = vadd.f32 0.4994258, %v200_v39 }
  0xca   :  { %v190_v53 = vadd.f32 0.18741608, %v189_v49  ;;  %v1153_v49 = vld [vmem:[#allocation8 + $0x1e0] sm:$0xf0] }
  0xcb   :  { %v238_v44 = vmul.f32 %v237_v40, %v222_v27  ;;  %v202_v45 = vmul.f32 %v201_v42, %v182_v16  ;;  %v227_v47 = vmul.f32 %v226_v41, %v222_v27 }
  0xcc   :  { %v191_v58 = vmul.f32 %v190_v53, %v182_v16 }
  0xcd   :  { %v239_v46 = vadd.f32 0.112945676, %v238_v44  ;;  %v203_v48 = vadd.f32 1.0, %v202_v45  ;;  %v228_v52 = vadd.f32 0.05243302, %v227_v47 }
  0xce   :  { %v192_v63 = vadd.f32 1.1283791, %v191_v58  ;;  %v1151_v45 = vld [vmem:[#allocation8 + $0x1c0] sm:$0xf]  ;;  %v1246_v47 = vld [vmem:[#allocation8 + $0x1c4] sm:$0xf] }
  0xcf   :  { %v240_v50 = vmul.f32 %v239_v46, %v222_v27  ;;  %1275 = vrcp.f32 %v203_v48  ;;  %v229_v57 = vmul.f32 %v228_v52, %v222_v27  ;;  %v215_v62 = vand.u32 2147483648, %v203_v48  ;;  %v1250_v46 = vld [vmem:[#allocation8 + $0x1dc] sm:$0xf0] }
  0xd0   :  { %v213_v1 = vand.u32 2147483647, %v203_v48  ;;  %vm209_vm1 = vweird.f32 %v203_v48  ;;  %v193_v7 = vmul.f32 %v192_v63, %v179_v14  ;;  %v1156_v52 = vor.u32 %v1246_v47, %v1153_v49  ;;  %v1242_v58 = vld [vmem:[#allocation8 + $0x19c] sm:$0xf0]  ;;  %v1243_v63 = vld [vmem:[#allocation8 + $0x1a4] sm:$0xf0] }
  0xd1   :  { %v241_v51 = vadd.f32 0.4994258, %v240_v50  ;;  %v230_v61 = vadd.f32 0.18741608, %v229_v57  ;;  %v216_v5 = vor.u32 1.1754944e-38, %v215_v62 }
  0xd2   :  { %vm214_vm3 = vcmp.eq.f32.partialorder %v213_v1, 8.507059e+37  ;;  %v1159_v50 = vld [vmem:[#allocation8 + $0x1c8] sm:$0xf]  ;;  %752 = vmatpush.bf16.msra.mxu2 %v1156_v52  ;;  %v1119_v57 = vld [vmem:[#allocation8 + $0x180] sm:$0xf] }
  0xd3   :  { %v242_v54 = vmul.f32 %v241_v51, %v222_v27  ;;  %v231_v4 = vmul.f32 %v230_v61, %v222_v27  ;;  %v1251_v51 = vld [vmem:[#allocation8 + $0x1e4] sm:$0xf0]  ;;  %v1121_v61 = vld [vmem:[#allocation8 + $0x1a0] sm:$0xf0] }
  0xd4   :  { %v1160_v53 = vor.u32 %v1251_v51, %v1159_v50  ;;  %v1127_v62 = vld [vmem:[#allocation8 + $0x188] sm:$0xf] }
  0xd5   :  { %v243_v55 = vadd.f32 1.0, %v242_v54  ;;  %v1276_v56 = vpop.eup %1275  ;;  %v232_v15 = vadd.f32 1.1283791, %v231_v4  ;;  %v1247_v54 = vld [vmem:[#allocation8 + $0x1cc] sm:$0xf]  ;;  %v1128_v1 = vor.u32 %v1243_v63, %v1127_v62 }
  0xd6   :  { %v205_v59 = vmul.f32 %v1276_v56, %v203_v48  ;;  %vm210_vm0 = vweird.f32 %v1276_v56  ;;  %v1152_v48 = vor.u32 %v1250_v46, %v1151_v45  ;;  %766 = vmatpush.bf16.msra.mxu3 %v1160_v53  ;;  %v1210_v45 = vld [vmem:[#allocation8 + $0x9c] sm:$0xf0]  ;;  %v1206_v46 = vld [vmem:[#allocation8 + $0x84] sm:$0xf]  ;;  %v999_v49 = vld [vmem:[#allocation8 + $0x88] sm:$0xf] }
  0xd7   :  { %1277 = vrcp.f32 %v243_v55  ;;  %vm211_vm2 = vmor %vm209_vm1, %vm210_vm0  ;;  %v255_v12 = vand.u32 2147483648, %v243_v55  ;;  %v253_v17 = vand.u32 2147483647, %v243_v55  ;;  %vm249_vm5 = vweird.f32 %v243_v55  ;;  %v1211_v50 = vld [vmem:[#allocation8 + $0xa4] sm:$0xf0] }
  0xd8   :  { %v206_v60 = vsub.f32 1.0, %v205_v59  ;;  %v233_v14 = vmul.f32 %v232_v15, %v1489_v22  ;;  %1279 = vrcp.f32 %v1423_v33  ;;  %738 = vmatpush.bf16.msra.mxu1 %v1152_v48  ;;  %v1238_v59 = vld [vmem:[#allocation8 + $0x184] sm:$0xf]  ;;  %v1218_v33 = vld [vmem:[#allocation8 + $0xdc] sm:$0xf0]  ;;  %v1000_v52 = vor.u32 %v1211_v50, %v999_v49 }
  0xd9   :  { %v256_v24 = vor.u32 1.1754944e-38, %v255_v12  ;;  %vm254_vm7 = vcmp.eq.f32.partialorder %v253_v17, 8.507059e+37  ;;  %v1097_v17 = vld [vmem:[#allocation8 + $0x168] sm:$0xf0]  ;;  %v993_v48 = vld [vmem:[#allocation8 + $0xa0] sm:$0xf0] }
  0xda   :  { %v207_v0 = vmul.f32 %v1276_v56, %v206_v60  ;;  %v1120_v60 = vor.u32 %v1242_v58, %v1119_v57  ;;  %767 = vmatpush.bf16.msra.mxu3 %v1128_v1  ;;  %v996_v51 = vor.u32 %v1206_v46, %v993_v48  ;;  %v1207_v53 = vld [vmem:[#allocation8 + $0x8c] sm:$0xf]  ;;  %v1202_v57 = vld [vmem:[#allocation8 + $0x5c] sm:$0xf0]  ;;  %v1198_v58 = vld [vmem:[#allocation8 + $0x44] sm:$0xf] }
  0xdb   :  { %v1203_v62 = vld [vmem:[#allocation8 + $0x64] sm:$0xf0]  ;;  %v1199_v1 = vld [vmem:[#allocation8 + $0x4c] sm:$0xf]  ;;  %v1103_v46 = vld [vmem:[#allocation8 + $0x150] sm:$0xf] }
  0xdc   :  { %v208_v3 = vadd.f32 %v1276_v56, %v207_v0  ;;  %v1124_v0 = vor.u32 %v1238_v59, %v1121_v61  ;;  %739 = vmatpush.bf16.msra.mxu1 %v1120_v60  ;;  %v961_v60 = vld [vmem:[#allocation8 + $0x60] sm:$0xf0]  ;;  %v967_v61 = vld [vmem:[#allocation8 + $0x48] sm:$0xf]  ;;  %v1232_v48 = vld [vmem:[#allocation8 + $0x154] sm:$0xf] }
  0xdd   :  { %v1278_v2 = vpop.eup %1277  ;;  %v964_v63 = vor.u32 %v1198_v58, %v961_v60  ;;  %v1105_v50 = vld [vmem:[#allocation8 + $0x170] sm:$0xf0]  ;;  %v1071_v58 = vld [vmem:[#allocation8 + $0x110] sm:$0xf] }
  0xde   :  { %v245_v6 = vmul.f32 %v1278_v2, %v243_v55  ;;  %v212_v8 = vsel %vm211_vm2, %v1276_v56, %v208_v3  ;;  %vm250_vm4 = vweird.f32 %v1278_v2  ;;  %v1280_v13 = vpop.eup %1279  ;;  %v1161_v55 = vld [vmem:[#allocation8 + $0x1e8] sm:$0xf0]  ;;  %753 = vmatpush.bf16.msra.mxu2 %v1124_v0  ;;  %v968_v0 = vor.u32 %v1203_v62, %v967_v61  ;;  %v1228_v61 = vld [vmem:[#allocation8 + $0x12c] sm:$0xf0]  ;;  %v1224_v62 = vld [vmem:[#allocation8 + $0x114] sm:$0xf] }
  0xdf   :  { %v217_v9 = vsel %vm214_vm3, %v216_v5, %v212_v8  ;;  %vm251_vm6 = vmor %vm249_vm5, %vm250_vm4  ;;  %v270_v34 = vmul.f32 128.0, %v1280_v13  ;;  %vm274_vm8 = vweird.f32 %v1280_v13  ;;  %v1164_v56 = vor.u32 %v1247_v54, %v1161_v55  ;;  %v1129_v3 = vld [vmem:[#allocation8 + $0x1a8] sm:$0xf0]  ;;  %v1087_v5 = vld [vmem:[#allocation8 + $0x140] sm:$0xf] }
  0xe0   :  { %v246_v10 = vsub.f32 1.0, %v245_v6  ;;  %v218_v11 = vmul.f32 %v217_v9, %v193_v7  ;;  %v1234_v6 = vld [vmem:[#allocation8 + $0x15c] sm:$0xf0]  ;;  %v1230_v7 = vld [vmem:[#allocation8 + $0x144] sm:$0xf] }
  0xe1   :  { %v271_v35 = vsub.f32 1.0, %v270_v34  ;;  %780 = vmatpush.bf16.msrb.mxu0 %v1164_v56  ;;  %v1088_v8 = vor.u32 %v1234_v6, %v1087_v5  ;;  %v1089_v9 = vld [vmem:[#allocation8 + $0x160] sm:$0xf0]  ;;  %v1001_v54 = vld [vmem:[#allocation8 + $0xa8] sm:$0xf0] }
  0xe2   :  { %v247_v16 = vmul.f32 %v1278_v2, %v246_v10  ;;  %v919_v18 = vclamps-f32 %v218_v11, 1.0  ;;  %v1095_v10 = vld [vmem:[#allocation8 + $0x148] sm:$0xf]  ;;  %v1092_v12 = vor.u32 %v1230_v7, %v1089_v9  ;;  %v1004_v55 = vor.u32 %v1207_v53, %v1001_v54  ;;  %v959_v56 = vld [vmem:[#allocation8 + $0x40] sm:$0xf] }
  0xe3   :  { %v272_v36 = vmul.f32 %v1280_v13, %v271_v35  ;;  %v1235_v11 = vld [vmem:[#allocation8 + $0x164] sm:$0xf0]  ;;  %740 = vmatpush.bf16.msra.mxu1 %v1088_v8  ;;  %v1025_v35 = vld [vmem:[#allocation8 + $0xe0] sm:$0xf0]  ;;  %v960_v59 = vor.u32 %v1202_v57, %v959_v56  ;;  %v1194_v5 = vld [vmem:[#allocation8 + $0x1c] sm:$0xf0]  ;;  %v1108_v54 = vor.u32 %v1232_v48, %v1105_v50 }
  0xe4   :  { %v248_v20 = vadd.f32 %v1278_v2, %v247_v16  ;;  %v261_v23 = vadd.f32 1.0, %v919_v18  ;;  %v1096_v15 = vor.u32 %v1235_v11, %v1095_v10  ;;  %v1231_v16 = vld [vmem:[#allocation8 + $0x14c] sm:$0xf]  ;;  %754 = vmatpush.bf16.msra.mxu2 %v1092_v12  ;;  %v1190_v6 = vld [vmem:[#allocation8 + $0x4] sm:$0xf] }
  0xe5   :  { %v273_v37 = vadd.f32 %v1280_v13, %v272_v36  ;;  %v1100_v18 = vor.u32 %v1231_v16, %v1097_v17  ;;  %v1031_v36 = vld [vmem:[#allocation8 + $0xc8] sm:$0xf]  ;;  %v929_v8 = vld [vmem:[#allocation8 + $0x20] sm:$0xf0]  ;;  %v937_v16 = vld [vmem:[#allocation8 + $0x28] sm:$0xf0] }
  0xe6   :  { %v252_v25 = vsel %vm251_vm6, %v1278_v2, %v248_v20  ;;  %v263_v26 = vmul.f32 %v261_v23, %v177_v21  ;;  %v1239_v2 = vld [vmem:[#allocation8 + $0x18c] sm:$0xf]  ;;  %768 = vmatpush.bf16.msra.mxu3 %v1096_v15  ;;  %v1055_v20 = vld [vmem:[#allocation8 + $0x100] sm:$0xf]  ;;  %v1222_v23 = vld [vmem:[#allocation8 + $0x104] sm:$0xf]  ;;  %v932_v11 = vor.u32 %v1190_v6, %v929_v8 }
  0xe7   :  { %v257_v27 = vsel %vm254_vm7, %v256_v24, %v252_v25  ;;  %v1496_v22 = vsel %vm274_vm8, %v1280_v13, %v273_v37  ;;  %v1132_v4 = vor.u32 %v1239_v2, %v1129_v3  ;;  %v1226_v21 = vld [vmem:[#allocation8 + $0x11c] sm:$0xf0]  ;;  %v1063_v25 = vld [vmem:[#allocation8 + $0x108] sm:$0xf]  ;;  %v1214_v13 = vld [vmem:[#allocation8 + $0xc4] sm:$0xf] }
  0xe8   :  { %v258_v28 = vmul.f32 %v257_v27, %v233_v14  ;;  %265 = vadd.xlane.f32.xlu0 %v263_v26  ;;  %v1056_v24 = vor.u32 %v1226_v21, %v1055_v20  ;;  %v1057_v14 = vld [vmem:[#allocation8 + $0x120] sm:$0xf0]  ;;  %v1219_v37 = vld [vmem:[#allocation8 + $0xe4] sm:$0xf0]  ;;  %v969_v2 = vld [vmem:[#allocation8 + $0x68] sm:$0xf0] }
  0xe9   :  { %781 = vmatpush.bf16.msrb.mxu0 %v1132_v4  ;;  %v1060_v27 = vor.u32 %v1222_v23, %v1057_v14  ;;  %v972_v3 = vor.u32 %v1199_v1, %v969_v2  ;;  %v927_v4 = vld [vmem:[#allocation8] sm:$0xf]  ;;  %v935_v9 = vld [vmem:[#allocation8 + $0x8] sm:$0xf]  ;;  %v1191_v15 = vld [vmem:[#allocation8 + $0xc] sm:$0xf] }
  0xea   :  { %v920_v29 = vclamps-f32 %v258_v28, 1.0  ;;  %741 = vmatpush.bf16.msra.mxu1 %v1056_v24  ;;  %v928_v7 = vor.u32 %v1194_v5, %v927_v4  ;;  %v1195_v10 = vld [vmem:[#allocation8 + $0x24] sm:$0xf0]  ;;  %v1167_v17 = vld [vmem:[#allocation8 + $0x1d0] sm:$0xf]  ;;  %v940_v20 = vor.u32 %v1191_v15, %v937_v16  ;;  %v1072_v5 = vor.u32 %v1228_v61, %v1071_v58 }
  0xeb   :  { %755 = vmatpush.bf16.msra.mxu2 %v1060_v27  ;;  %v936_v12 = vor.u32 %v1195_v10, %v935_v9  ;;  %v1252_v21 = vld [vmem:[#allocation8 + $0x1ec] sm:$0xf0]  ;;  %v1248_v23 = vld [vmem:[#allocation8 + $0x1d4] sm:$0xf]  ;;  %v1175_v27 = vld [vmem:[#allocation8 + $0x1d8] sm:$0xf] }
  0xec   :  { %v262_v31 = vadd.f32 1.0, %v920_v29  ;;  %v1223_v29 = vld [vmem:[#allocation8 + $0x10c] sm:$0xf]  ;;  %v1169_v24 = vld [vmem:[#allocation8 + $0x1f0] sm:$0xf0] }
  0xed   :  { %782 = vmatpush.bf16.msrb.mxu0 %v1100_v18  ;;  %v1233_v56 = vld [vmem:[#allocation8 + $0x15c] sm:$0xf]  ;;  %v1229_v1 = vld [vmem:[#allocation8 + $0x134] sm:$0xf0]  ;;  %v1216_v15 = vld [vmem:[#allocation8 + $0xd4] sm:$0xf] }
  0xee   :  { %v264_v32 = vmul.f32 %v262_v31, %v178_v30  ;;  %v1065_v30 = vld [vmem:[#allocation8 + $0x128] sm:$0xf0]  ;;  %v1113_v57 = vld [vmem:[#allocation8 + $0x178] sm:$0xf0]  ;;  %v977_v48 = vld [vmem:[#allocation8 + $0x70] sm:$0xf0] }
  0xef   :  { %v1068_v31 = vor.u32 %v1223_v29, %v1065_v30  ;;  %v1249_v29 = vld [vmem:[#allocation8 + $0x1dc] sm:$0xf]  ;;  %v1116_v60 = vor.u32 %v1233_v56, %v1113_v57  ;;  %v943_v58 = vld [vmem:[#allocation8 + $0x10] sm:$0xf]  ;;  %v1192_v61 = vld [vmem:[#allocation8 + $0x14] sm:$0xf] }
  0xf0   :  { %267 = vadd.xlane.f32.xlu0 %v264_v32  ;;  %v1225_v2 = vld [vmem:[#allocation8 + $0x11c] sm:$0xf] }
  0xf1   :  { %783 = vmatpush.bf16.msrb.mxu0 %v1068_v31  ;;  %v1177_v31 = vld [vmem:[#allocation8 + $0x1f8] sm:$0xf0] }
 0x15b   :  { %v266_v38 = vpop.xlane.xlu0 %265 }
 0x15c   :  { %v276_v39 = vmul.f32 %v1496_v22, %v266_v38  ;;  %v1028_v38 = vor.u32 %v1214_v13, %v1025_v35 }
 0x15e   :  { %v1499_v40 = vsub.f32 %v263_v26, %v276_v39  ;;  %v1227_v26 = vld [vmem:[#allocation8 + $0x124] sm:$0xf0]  ;;  %v1032_v39 = vor.u32 %v1219_v37, %v1031_v36  ;;  %756 = vmatpush.bf16.msra.mxu2 %v1028_v38  ;;  %v1240_v36 = vld [vmem:[#allocation8 + $0x194] sm:$0xf] }
 0x15f   :  { %v1064_v28 = vor.u32 %v1227_v26, %v1063_v25  ;;  %v1168_v25 = vor.u32 %v1252_v21, %v1167_v17  ;;  %v1172_v26 = vor.u32 %v1248_v23, %v1169_v24  ;;  %v1137_v37 = vld [vmem:[#allocation8 + $0x1b0] sm:$0xf0]  ;;  %v1221_v23 = vld [vmem:[#allocation8 + $0xf4] sm:$0xf0]  ;;  %v1217_v24 = vld [vmem:[#allocation8 + $0xdc] sm:$0xf] }
 0x160   :  { %v280_v19 = vmul.f32 %v1499_v40, %v1499_v40  ;;  %v1140_v38 = vor.u32 %v1240_v36, %v1137_v37 }
 0x161   :  { %769 = vmatpush.bf16.msra.mxu3 %v1064_v28  ;;  %v1253_v28 = vld [vmem:[#allocation8 + $0x1f4] sm:$0xf0] }
 0x162   :  { %282 = vadd.xlane.f32.xlu1 %v280_v19  ;;  %v1215_v19 = vld [vmem:[#allocation8 + $0xcc] sm:$0xf]  ;;  %757 = vmatpush.bf16.msra.mxu2 %v996_v51  ;;  %v1176_v30 = vor.u32 %v1253_v28, %v1175_v27  ;;  %v1111_v51 = vld [vmem:[#allocation8 + $0x158] sm:$0xf]  ;;  %v1007_v28 = vld [vmem:[#allocation8 + $0x90] sm:$0xf] }
 0x163   :  { %v268_v41 = vpop.xlane.xlu0 %267 }
 0x164   :  { %v277_v42 = vmul.f32 %v1496_v22, %v268_v41  ;;  %v1033_v41 = vld [vmem:[#allocation8 + $0xe8] sm:$0xf0] }
 0x165   :  { %770 = vmatpush.bf16.msra.mxu3 %v1032_v39  ;;  %v1143_v39 = vld [vmem:[#allocation8 + $0x198] sm:$0xf] }
 0x166   :  { %v1504_v43 = vsub.f32 %v264_v32, %v277_v42  ;;  %v1023_v32 = vld [vmem:[#allocation8 + $0xc0] sm:$0xf]  ;;  %v1036_v42 = vor.u32 %v1215_v19, %v1033_v41  ;;  %758 = vmatpush.bf16.msra.mxu2 %v964_v63  ;;  %v1245_v19 = vld [vmem:[#allocation8 + $0x1b4] sm:$0xf0]  ;;  %v1241_v41 = vld [vmem:[#allocation8 + $0x19c] sm:$0xf] }
 0x167   :  { %v1024_v34 = vor.u32 %v1218_v33, %v1023_v32  ;;  %v1135_v32 = vld [vmem:[#allocation8 + $0x190] sm:$0xf]  ;;  %v1073_v63 = vld [vmem:[#allocation8 + $0x130] sm:$0xf0] }
 0x168   :  { %v281_v44 = vmul.f32 %v1504_v43, %v1504_v43  ;;  %784 = vmatpush.bf16.msrb.mxu0 %v1036_v42  ;;  %v1244_v33 = vld [vmem:[#allocation8 + $0x1ac] sm:$0xf0]  ;;  %v1144_v42 = vor.u32 %v1245_v19, %v1143_v39  ;;  %v1076_v6 = vor.u32 %v1224_v62, %v1073_v63  ;;  %v1209_v39 = vld [vmem:[#allocation8 + $0x9c] sm:$0xf]  ;;  %v945_v62 = vld [vmem:[#allocation8 + $0x30] sm:$0xf0] }
 0x169   :  { %742 = vmatpush.bf16.msra.mxu1 %v1024_v34  ;;  %771 = vmatpush.bf16.msra.mxu3 %v1000_v52  ;;  %v1180_v34 = vor.u32 %v1249_v29, %v1177_v31  ;;  %v1136_v35 = vor.u32 %v1244_v33, %v1135_v32  ;;  %v1237_v52 = vld [vmem:[#allocation8 + $0x174] sm:$0xf0]  ;;  %v1212_v29 = vld [vmem:[#allocation8 + $0xac] sm:$0xf0]  ;;  %v1208_v32 = vld [vmem:[#allocation8 + $0x94] sm:$0xf] }
 0x16a   :  { %284 = vadd.xlane.f32.xlu1 %v281_v44  ;;  %v991_v44 = vld [vmem:[#allocation8 + $0x80] sm:$0xf]  ;;  %759 = vmatpush.bf16.msra.mxu2 %v932_v11  ;;  %v1039_v11 = vld [vmem:[#allocation8 + $0xd0] sm:$0xf]  ;;  %v1008_v31 = vor.u32 %v1212_v29, %v1007_v28  ;;  %v1009_v33 = vld [vmem:[#allocation8 + $0xb0] sm:$0xf0] }
 0x16b   :  { %v992_v47 = vor.u32 %v1210_v45, %v991_v44  ;;  %v1145_v44 = vld [vmem:[#allocation8 + $0x1b8] sm:$0xf0]  ;;  %v1012_v37 = vor.u32 %v1208_v32, %v1009_v33  ;;  %v951_v63 = vld [vmem:[#allocation8 + $0x18] sm:$0xf] }
 0x16c   :  { %785 = vmatpush.bf16.msrb.mxu0 %v1004_v55  ;;  %v1148_v45 = vor.u32 %v1241_v41, %v1145_v44  ;;  %v1112_v55 = vor.u32 %v1237_v52, %v1111_v51  ;;  %v1017_v19 = vld [vmem:[#allocation8 + $0xb8] sm:$0xf0]  ;;  %v1205_v52 = vld [vmem:[#allocation8 + $0x74] sm:$0xf0] }
 0x16d   :  { %743 = vmatpush.bf16.msra.mxu1 %v992_v47  ;;  %772 = vmatpush.bf16.msra.mxu3 %v968_v0  ;;  %v1236_v47 = vld [vmem:[#allocation8 + $0x16c] sm:$0xf0]  ;;  %v1079_v0 = vld [vmem:[#allocation8 + $0x118] sm:$0xf]  ;;  %v1020_v44 = vor.u32 %v1209_v39, %v1017_v19 }
 0x16e   :  { %808 = vmatpush.bf16.msrb.mxu2 %v1172_v26  ;;  %v1104_v49 = vor.u32 %v1236_v47, %v1103_v46  ;;  %v1080_v8 = vor.u32 %v1229_v1, %v1079_v0  ;;  %v1204_v46 = vld [vmem:[#allocation8 + $0x6c] sm:$0xf0]  ;;  %v1200_v47 = vld [vmem:[#allocation8 + $0x54] sm:$0xf]  ;;  %v1197_v1 = vld [vmem:[#allocation8 + $0x34] sm:$0xf0] }
 0x16f   :  { %v980_v51 = vor.u32 %v1200_v47, %v977_v48 }
 0x170   :  { %786 = vmatpush.bf16.msrb.mxu0 %v972_v3 }
 0x171   :  { %744 = vmatpush.bf16.msra.mxu1 %v960_v59  ;;  %773 = vmatpush.bf16.msra.mxu3 %v936_v12  ;;  %v1220_v12 = vld [vmem:[#allocation8 + $0xec] sm:$0xf0] }
 0x172   :  { %809 = vmatpush.bf16.msrb.mxu2 %v1140_v38  ;;  %v1040_v17 = vor.u32 %v1220_v12, %v1039_v11  ;;  %v1213_v38 = vld [vmem:[#allocation8 + $0xb4] sm:$0xf0] }
 0x174   :  { %787 = vmatpush.bf16.msrb.mxu0 %v940_v20  ;;  %v1047_v20 = vld [vmem:[#allocation8 + $0xd8] sm:$0xf] }
 0x175   :  { %745 = vmatpush.bf16.msra.mxu1 %v928_v7  ;;  %822 = vmatpush.bf16.msrb.mxu3 %v1176_v30  ;;  %v1081_v7 = vld [vmem:[#allocation8 + $0x138] sm:$0xf0]  ;;  %v1048_v26 = vor.u32 %v1221_v23, %v1047_v20 }
 0x176   :  { %810 = vmatpush.bf16.msrb.mxu2 %v1108_v54  ;;  %v1084_v9 = vor.u32 %v1225_v2, %v1081_v7  ;;  %v985_v54 = vld [vmem:[#allocation8 + $0x78] sm:$0xf0]  ;;  %v948_v7 = vor.u32 %v1192_v61, %v945_v62 }
 0x177   :  { %v1193_v2 = vld [vmem:[#allocation8 + $0x1c] sm:$0xf] }
 0x178   :  { %836 = vmatpush.bf16.msra.mxu0 %v1180_v34  ;;  %v1015_v34 = vld [vmem:[#allocation8 + $0x98] sm:$0xf] }
 0x179   :  { %794 = vmatpush.bf16.msrb.mxu1 %v1168_v25  ;;  %823 = vmatpush.bf16.msrb.mxu3 %v1144_v42  ;;  %v1016_v42 = vor.u32 %v1213_v38, %v1015_v34 }
 0x17a   :  { %811 = vmatpush.bf16.msrb.mxu2 %v1076_v6 }
 0x17c   :  { %837 = vmatpush.bf16.msra.mxu0 %v1148_v45  ;;  %v975_v45 = vld [vmem:[#allocation8 + $0x50] sm:$0xf] }
 0x17d   :  { %795 = vmatpush.bf16.msrb.mxu1 %v1136_v35  ;;  %824 = vmatpush.bf16.msrb.mxu3 %v1112_v55  ;;  %v976_v50 = vor.u32 %v1204_v46, %v975_v45 }
 0x180   :  { %838 = vmatpush.bf16.msra.mxu0 %v1116_v60 }
 0x181   :  { %796 = vmatpush.bf16.msrb.mxu1 %v1104_v49  ;;  %825 = vmatpush.bf16.msrb.mxu3 %v1080_v8  ;;  %v983_v49 = vld [vmem:[#allocation8 + $0x58] sm:$0xf] }
 0x182   :  { %v984_v57 = vor.u32 %v1205_v52, %v983_v49 }
 0x184   :  { %839 = vmatpush.bf16.msra.mxu0 %v1084_v9  ;;  %v952_v9 = vor.u32 %v1197_v1, %v951_v63 }
 0x185   :  { %797 = vmatpush.bf16.msrb.mxu1 %v1072_v5  ;;  %826 = vmatpush.bf16.msrb.mxu3 %v1048_v26  ;;  %v1273_v5 = vld [vmem:[%s1557_s3] ss:$0 sm:$0xff] }
 0x189   :  { %798 = vmatpush.bf16.msrb.mxu1 %v1040_v17  ;;  %827 = vmatpush.bf16.msrb.mxu3 %v1016_v42 }
 0x18d   :  { %799 = vmatpush.bf16.msrb.mxu1 %v1008_v31  ;;  %828 = vmatpush.bf16.msrb.mxu3 %v984_v57 }
 0x191   :  { %800 = vmatpush.bf16.msrb.mxu1 %v976_v50  ;;  %829 = vmatpush.bf16.msrb.mxu3 %v952_v9 }
 0x1d5   :  { %v283_v18 = vpop.xlane.xlu1 %282 }
 0x1d6   :  { %v286_v14 = vmul.f32 %v283_v18, %v1496_v22  ;;  %v1041_v18 = vld [vmem:[#allocation8 + $0xf0] sm:$0xf0] }
 0x1d7   :  { %v1044_v21 = vor.u32 %v1216_v15, %v1041_v18 }
 0x1d8   :  { %v1509_v13 = vadd.f32 1e-05, %v286_v14  ;;  %v1049_v14 = vld [vmem:[#allocation8 + $0xf8] sm:$0xf0] }
 0x1d9   :  { %v1052_v27 = vor.u32 %v1217_v24, %v1049_v14  ;;  %812 = vmatpush.bf16.msrb.mxu2 %v1044_v21  ;;  %v394_v21 = vld [vmem:[#allocation9] sm:$0xff] }
 0x1da   :  { %1281 = vrsqrt.f32 %v1509_v13  ;;  %vm296_vm10 = vweird.f32 %v1509_v13  ;;  %v399_v23 = vperm.slane %v394_v21, 3  ;;  %v398_v28 = vperm.slane %v394_v21, 2 }
 0x1db   :  { %840 = vmatpush.bf16.msra.mxu0 %v1052_v27  ;;  %v397_v27 = vperm.slane %v394_v21, 1  ;;  %v403_v39 = vperm.slane %v394_v21, 7  ;;  %v401_v47 = vperm.slane %v394_v21, 5  ;;  %v402_v48 = vperm.slane %v394_v21, 6 }
 0x1dd   :  { %v285_v53 = vpop.xlane.xlu1 %284  ;;  %813 = vmatpush.bf16.msrb.mxu2 %v1012_v37  ;;  %v400_v37 = vperm.slane %v394_v21, 4 }
 0x1de   :  { %v287_v59 = vmul.f32 %v285_v53, %v1496_v22  ;;  %v1201_v53 = vld [vmem:[#allocation8 + $0x5c] sm:$0xf] }
 0x1df   :  { %841 = vmatpush.bf16.msra.mxu0 %v1020_v44  ;;  %v988_v60 = vor.u32 %v1201_v53, %v985_v54 }
 0x1e0   :  { %v1513_v3 = vpop.eup %1281  ;;  %v1515_v4 = vadd.f32 1e-05, %v287_v59  ;;  %v1196_v59 = vld [vmem:[#allocation8 + $0x2c] sm:$0xf0] }
 0x1e1   :  { %v291_v22 = vmul.f32 %v1513_v3, %v1509_v13  ;;  %vm297_vm9 = vweird.f32 %v1513_v3  ;;  %814 = vmatpush.bf16.msrb.mxu2 %v980_v51  ;;  %v944_v6 = vor.u32 %v1196_v59, %v943_v58 }
 0x1e2   :  { %1283 = vrsqrt.f32 %v1515_v4  ;;  %vm1530_vm11 = vmor %vm296_vm10, %vm297_vm9  ;;  %vm306_vm13 = vweird.f32 %v1515_v4 }
 0x1e3   :  { %v292_v10 = vmul.f32 %v1513_v3, %v291_v22  ;;  %v953_v22 = vld [vmem:[#allocation8 + $0x38] sm:$0xf0]  ;;  %842 = vmatpush.bf16.msra.mxu0 %v988_v60  ;;  %801 = vmatpush.bf16.msrb.mxu1 %v944_v6 }
 0x1e5   :  { %v293_v16 = vmul.f32 0.5, %v292_v10  ;;  %v956_v10 = vor.u32 %v1193_v2, %v953_v22  ;;  %815 = vmatpush.bf16.msrb.mxu2 %v948_v7 }
 0x1e7   :  { %v294_v25 = vsub.f32 1.5, %v293_v16  ;;  %843 = vmatpush.bf16.msra.mxu0 %v956_v10 }
 0x1e8   :  { %v1522_v30 = vpop.eup %1283 }
 0x1e9   :  { %v295_v35 = vmul.f32 %v1513_v3, %v294_v25  ;;  %v301_v36 = vmul.f32 %v1522_v30, %v1515_v4  ;;  %vm307_vm12 = vweird.f32 %v1522_v30 }
 0x1ea   :  { %vm308_vm14 = vmor %vm306_vm13, %vm307_vm12 }
 0x1eb   :  { %v302_v13 = vmul.f32 %v1522_v30, %v301_v36  ;;  %v299_v55 = vsel %vm1530_vm11, %v1513_v3, %v295_v35 }
 0x1ec   :  { %v310_v3 = vmul.f32 %v299_v55, %v1499_v40  ;;  %v1274_v40 = vld [vmem:[%s1558_s4] ss:$0 sm:$0xff]  ;;  %s1424_s4 = smov [#allocation11]  }
 0x1ed   :  { %v303_v56 = vmul.f32 0.5, %v302_v13  ;;  %s870_s27 = sshll.u32 %s1424_s4, 4  ;;  %s871_s27 = int_to_ptr.vmem [resolvable:$true] %s870_s27 }
 0x1ee   :  { %v316_v12 = vmul.f32 %v1273_v5, %v310_v3 }
 0x1ef   :  { %v304_v0 = vsub.f32 1.5, %v303_v56 }
 0x1f0   :  { %v322_v4 = vadd.f32 %v1274_v40, %v316_v12 }
 0x1f1   :  { %v305_v8 = vmul.f32 %v1522_v30, %v304_v0 }
 0x1f3   :  { %v309_v11 = vsel %vm308_vm14, %v1522_v30, %v305_v8 }
 0x1f4   :  { %v311_v15 = vmul.f32 %v309_v11, %v1504_v43  ;;  %v396_v43 = vperm.slane %v394_v21, 0 }
 0x1f6   :  { %v317_v16 = vmul.f32 %v1273_v5, %v311_v15 }
 0x1f8   :  { %v323_v17 = vadd.f32 %v1274_v40, %v317_v16 }
 0x1fa   :  { %v1257_v18 = vpack.c.bf16 %v323_v17, %v322_v4 }
 0x1fc   :  { %1258 = vst [vmem:[#allocation2] sm:$0xff] %v1257_v18  }
 0x203   :  { %v1189_v20 = vld [vmem:[#allocation2] sm:$0xff] }
 0x204   :  { %746 = vmatmul.bf16.vlgmr.msra.gmra.mxu1 %v1189_v20  ;;  %760 = vmatmul.bf16.vlgmr.msra.gmra.mxu2 %v1189_v20 }
 0x205   :  { %774 = vmatmul.bf16.vlgmr.msra.gmra.mxu3 %v1189_v20  ;;  %788 = vmatmul.bf16.vlgmr.msrb.gmra.mxu0 %v1189_v20 }
 0x214   :  { %802 = vmatmul.bf16.vlgmr.msrb.gmra.mxu1 %v1189_v20  ;;  %816 = vmatmul.bf16.vlgmr.msrb.gmra.mxu2 %v1189_v20 }
 0x215   :  { %830 = vmatmul.bf16.vlgmr.msrb.gmra.mxu3 %v1189_v20  ;;  %844 = vmatmul.bf16.vlgmr.msra.gmra.mxu0 %v1189_v20 }
 0x281   :  { %v747_v24 = vpop.f32.mrf.mxu1 }
 0x282   :  { %v748_v14 = vadd.f32 %v747_v24, %v396_v43  ;;  %v789_v25 = vpop.f32.mrf.mxu0 }
 0x283   :  { %v790_v26 = vadd.f32 %v789_v25, %v399_v23 }
 0x284   :  { %850 = vst [vmem:[#allocation11] sm:$0xff] %v748_v14 }
 0x285   :  { %853 = vst [vmem:[#allocation11 + $0x18] sm:$0xff] %v790_v26 }
 0x287   :  { %v761_v29 = vpop.f32.mrf.mxu2 }
 0x288   :  { %v762_v30 = vadd.f32 %v761_v29, %v397_v27  ;;  %v775_v31 = vpop.f32.mrf.mxu3 }
 0x289   :  { %v776_v32 = vadd.f32 %v775_v31, %v398_v28  ;;  %v749_v33 = vpop.f32.mrf.mxu1 }
 0x28a   :  { %851 = vst [vmem:[#allocation11 + $0x8] sm:$0xff] %v762_v30  ;;  %v750_v34 = vadd.f32 %v749_v33, %v396_v43  ;;  %v791_v35 = vpop.f32.mrf.mxu0 }
 0x28b   :  { %852 = vst [vmem:[#allocation11 + $0x10] sm:$0xff] %v776_v32  ;;  %v792_v36 = vadd.f32 %v791_v35, %v399_v23 }
 0x28c   :  { %858 = vst [vmem:[#allocation11 + $0x40] sm:$0xff] %v750_v34 }
 0x28d   :  { %861 = vst [vmem:[#allocation11 + $0x58] sm:$0xff] %v792_v36 }
 0x28f   :  { %v763_v38 = vpop.f32.mrf.mxu2 }
 0x290   :  { %v764_v19 = vadd.f32 %v763_v38, %v397_v27  ;;  %v777_v41 = vpop.f32.mrf.mxu3 }
 0x291   :  { %v778_v42 = vadd.f32 %v777_v41, %v398_v28  ;;  %v803_v44 = vpop.f32.mrf.mxu1 }
 0x292   :  { %859 = vst [vmem:[#allocation11 + $0x48] sm:$0xff] %v764_v19  ;;  %v804_v45 = vadd.f32 %v803_v44, %v400_v37  ;;  %v845_v46 = vpop.f32.mrf.mxu0 }
 0x293   :  { %860 = vst [vmem:[#allocation11 + $0x50] sm:$0xff] %v778_v42  ;;  %v846_v13 = vadd.f32 %v845_v46, %v403_v39 }
 0x294   :  { %854 = vst [vmem:[#allocation11 + $0x20] sm:$0xff] %v804_v45 }
 0x295   :  { %857 = vst [vmem:[#allocation11 + $0x38] sm:$0xff] %v846_v13 }
 0x297   :  { %v817_v49 = vpop.f32.mrf.mxu2 }
 0x298   :  { %v818_v50 = vadd.f32 %v817_v49, %v401_v47  ;;  %v831_v51 = vpop.f32.mrf.mxu3 }
 0x299   :  { %v832_v52 = vadd.f32 %v831_v51, %v402_v48  ;;  %v805_v53 = vpop.f32.mrf.mxu1 }
 0x29a   :  { %855 = vst [vmem:[#allocation11 + $0x28] sm:$0xff] %v818_v50  ;;  %v806_v54 = vadd.f32 %v805_v53, %v400_v37  ;;  %v847_v55 = vpop.f32.mrf.mxu0 }
 0x29b   :  { %856 = vst [vmem:[#allocation11 + $0x30] sm:$0xff] %v832_v52  ;;  %v848_v56 = vadd.f32 %v847_v55, %v403_v39 }
 0x29c   :  { %862 = vst [vmem:[#allocation11 + $0x60] sm:$0xff] %v806_v54 }
 0x29d   :  { %865 = vst [vmem:[#allocation11 + $0x78] sm:$0xff] %v848_v56 }
 0x29f   :  { %v819_v57 = vpop.f32.mrf.mxu2 }
 0x2a0   :  { %v820_v58 = vadd.f32 %v819_v57, %v401_v47  ;;  %v833_v59 = vpop.f32.mrf.mxu3 }
 0x2a1   :  { %v834_v60 = vadd.f32 %v833_v59, %v402_v48 }
 0x2a2   :  { %863 = vst [vmem:[#allocation11 + $0x68] sm:$0xff] %v820_v58 }
 0x2a3   :  { %864 = vst [vmem:[#allocation11 + $0x70] sm:$0xff] %v834_v60 }
 0x2a4   :  { %878 = dma.vmem_to_hbm [thread:$0]  %s871_s27, 2048, %s873_s30, [#allocation5], %s1425_s8, %s1425_s8, %s1414_s9  }
 0x2a5   :  { %1411 = dma.done.wait [#allocation5], 2048  }
 0x2a6   :  { %1412 = vsyncadd [#allocation5], 4294965248 }
 0x2a7   :  { %883 = vsyncpa [#allocation4], 1 }
 0x2a8   :  { %884 = vsyncpa [#allocation7], 1 }
 0x2a9   :  { %885 = vsyncpa [#allocation10], 1 }
 0x2aa   :  { %886 = vsyncpa [#allocation5], 1 }

</bundles_post_ra>
